<compile_context>
chip_gen: v7x
topology: tpu7x:2x2x1
jax: 0.10.0
libtpu: 0.0.40
codegen_flags: <defaults>
</compile_context>

<pallas_src>
import jax
import jax.numpy as jnp
from jax.experimental import pallas as pl
from jax.experimental.pallas import tpu as pltpu

_LANE = 128  # TPU lane width


def dqn_kernel(x_ref, w1_ref, b1_ref, w2_ref, b2_ref, w3_ref, b3_ref, o_ref):
    """Fused forward: relu(x@W1+b1) -> relu(.@W2+b2) -> .@W3+b3, all in VMEM.

    Matmuls accumulate in f32 (preferred_element_type); bias-add and ReLU stay
    in f32 (v5e's VPU has no bf16); activations are cast back to the weight
    dtype only as MXU inputs.
    """
    x = x_ref[...]
    h1 = jnp.dot(x, w1_ref[...], preferred_element_type=jnp.float32) + b1_ref[...]
    h1 = jnp.maximum(h1, 0.0).astype(w2_ref.dtype)
    h2 = jnp.dot(h1, w2_ref[...], preferred_element_type=jnp.float32) + b2_ref[...]
    h2 = jnp.maximum(h2, 0.0).astype(w3_ref.dtype)
    out = jnp.dot(h2, w3_ref[...], preferred_element_type=jnp.float32) + b3_ref[...]
    o_ref[...] = out.astype(o_ref.dtype)


def _pick_batch_tile(batch, in_dim, itemsize, sublane):
    """Batch-tiling policy:
      * single grid step unless a per-step x tile reaches ~256 KB — below that
        the ~0.35us/step overhead costs more than any DMA overlap saves;
      * for large batches, up to 4096 rows/step (tiles stay far under the v7x
        64 MiB VMEM budget while the per-step DMA is big enough to hide);
      * when splitting, prefer an even number of steps so the "parallel" batch
        axis balances across v7x's two TensorCores.
    """
    row_bytes = max(1, in_dim) * itemsize
    min_split_rows = max(2 * sublane, -(-(256 * 1024) // row_bytes))
    if batch < 2 * min_split_rows:
        return batch                       # one grid step: overhead-bound regime
    tile = min(4096, batch // 2)
    tile = max(sublane, (tile // sublane) * sublane)
    steps = -(-batch // tile)
    if steps % 2:                          # even step count for v7x megacore balance
        steps += 1
        tile = -(-batch // steps)
        tile = max(sublane, -(-tile // sublane) * sublane)
    return tile


def _padded_tile_bytes(rows, cols, dtype):
    """VMEM footprint of a (rows, cols) tile after lane/sublane padding."""
    itemsize = jnp.dtype(dtype).itemsize
    sublane = max(8, 32 // itemsize)       # 8 for f32, 16 for bf16
    rp = -(-max(1, rows) // sublane) * sublane
    cp = -(-max(1, cols) // _LANE) * _LANE
    return rp * cp * itemsize


def prepare_params(raw_params, compute_dtype=None):
    """One-time parameter prep, hoisted out of the per-call forward.

    Casts weight matrices to the compute dtype (None keeps f32). Biases stay
    f32 because the bias-add/ReLU epilogue runs in f32 on every generation.
    bf16 is beneficial on v5e/v6e/v7x alike (bf16 MXU inputs, halved HBM /
    VMEM traffic for weights and x); accumulation remains f32.
    """
    p = dict(raw_params)
    if compute_dtype is not None:
        for k in ("w1", "w2", "w3"):
            p[k] = p[k].astype(compute_dtype)
    return p


def dqn_forward(x, params, *, batch_tile=None):
    """Run the fused DQN forward pass via pallas_call.

    x: (B, input_size); params: output of prepare_params() with
       w1 (in,64), b1 (1,64), w2 (64,64), b2 (1,64), w3 (64,out), b3 (1,out).
    Returns f32 Q-values of shape (B, out) — no padding, no post-slice.
    """
    w1, b1, w2, b2, w3, b3 = (params[k] for k in ("w1", "b1", "w2", "b2", "w3", "b3"))
    B, in_dim = x.shape
    hidden = w1.shape[1]
    out_dim = w3.shape[1]
    out_dtype = jnp.float32                # Q-values stay f32 (f32 MXU accumulation)

    compute_dtype = w1.dtype
    if x.dtype != compute_dtype:
        x = x.astype(compute_dtype)        # only per-call prologue op (weights pre-cast)
    sublane = 16 if compute_dtype == jnp.bfloat16 else 8

    if batch_tile is None:
        batch_tile = _pick_batch_tile(B, in_dim, jnp.dtype(compute_dtype).itemsize, sublane)
    batch_tile = min(batch_tile, B)

    grid = (pl.cdiv(B, batch_tile),)
    # Note: if B % batch_tile != 0 the last grid step feeds a few garbage rows
    # through the matmuls; Pallas masks the writeback, so results are correct.

    # Weights/biases are tiny, have constant index maps, and are fetched once.
    def full(shape):
        return pl.BlockSpec(shape, lambda i, _nd=len(shape): (0,) * _nd)

    # --- scoped-VMEM budget from the *padded* tile shapes (+2x headroom) ---
    vmem_bytes = 2 * _padded_tile_bytes(batch_tile, in_dim, compute_dtype)      # x double buffer
    vmem_bytes += 2 * _padded_tile_bytes(batch_tile, out_dim, out_dtype)        # out double buffer
    for a in (w1, b1, w2, b2, w3, b3):                                          # weight buffers (2-deep)
        vmem_bytes += 2 * _padded_tile_bytes(a.shape[0], a.shape[1], a.dtype)
    vmem_bytes += 2 * _padded_tile_bytes(batch_tile, hidden, jnp.float32)       # h1/h2 f32 intermediates
    vmem_bytes += _padded_tile_bytes(batch_tile, out_dim, jnp.float32)          # f32 out before cast
    # 48 MiB clamp: headroom under v7x's 64 MiB physical VMEM; v5e/v6e have 128 MiB.
    vmem_limit = min(max(int(vmem_bytes * 2), 8 << 20), 48 << 20)

    return pl.pallas_call(
        dqn_kernel,
        out_shape=jax.ShapeDtypeStruct((B, out_dim), out_dtype),
        grid_spec=pltpu.PrefetchScalarGridSpec(
            num_scalar_prefetch=0,
            grid=grid,
            in_specs=[
                pl.BlockSpec((batch_tile, in_dim), lambda i: (i, 0)),  # x tile (streamed)
                full(w1.shape), full(b1.shape),
                full(w2.shape), full(b2.shape),
                full(w3.shape), full(b3.shape),
            ],
            # True out_dim block (== full array dim, so legal): no padded writeback,
            # no external strided slice.
            out_specs=pl.BlockSpec((batch_tile, out_dim), lambda i: (i, 0)),
        ),
        compiler_params=pltpu.CompilerParams(
            dimension_semantics=("parallel",),   # batch axis: pipeline + megacore shard
            vmem_limit_bytes=vmem_limit,
        ),
    )(x, w1, b1, w2, b2, w3, b3)


def init_dqn_params(key, input_size, output_size, hidden=64, dtype=jnp.float32):
    """Deterministic synthetic init (matches PyTorch Linear shapes, stored transposed)."""
    ks = jax.random.split(key, 6)

    def lin(kw, kb, fan_in, fan_out):
        bound = 1.0 / jnp.sqrt(fan_in)
        w = jax.random.uniform(kw, (fan_in, fan_out), dtype, -bound, bound)
        b = jax.random.uniform(kb, (1, fan_out), dtype, -bound, bound)
        return w, b

    w1, b1 = lin(ks[0], ks[1], input_size, hidden)
    w2, b2 = lin(ks[2], ks[3], hidden, hidden)
    w3, b3 = lin(ks[4], ks[5], hidden, output_size)
    return {"w1": w1, "b1": b1, "w2": w2, "b2": b2, "w3": w3, "b3": b3}


def dqn_reference(x, p):
    """Pure-JAX reference mirroring the kernel's dtype handling."""
    cd = p["w1"].dtype
    h1 = jnp.maximum(
        jnp.dot(x.astype(cd), p["w1"], preferred_element_type=jnp.float32) + p["b1"], 0.0)
    h2 = jnp.maximum(
        jnp.dot(h1.astype(cd), p["w2"], preferred_element_type=jnp.float32) + p["b2"], 0.0)
    return jnp.dot(h2.astype(cd), p["w3"], preferred_element_type=jnp.float32) + p["b3"]


if __name__ == "__main__":
    key = jax.random.PRNGKey(0)
    k_x, k_p = jax.random.split(key)

    # DQN-typical small shapes: replay minibatch of 256 states, 16 features, 4 actions.
    batch, input_size, output_size = 256, 16, 4
    x = jax.random.normal(k_x, (batch, input_size), dtype=jnp.float32)
    raw_params = init_dqn_params(k_p, input_size, output_size)

    # f32 path — at this size the policy picks a single grid step (overhead-bound regime).
    p_f32 = prepare_params(raw_params)
    out_f32 = jax.block_until_ready(dqn_forward(x, p_f32))
    ref_f32 = dqn_reference(x, p_f32)
    assert out_f32.shape == (batch, output_size)
    assert jnp.allclose(out_f32, ref_f32, atol=1e-5, rtol=1e-5), "f32 mismatch vs reference"

    # Exercise the multi-step (pipelined / megacore-shardable) path explicitly.
    out_tiled = jax.block_until_ready(dqn_forward(x, p_f32, batch_tile=64))
    assert jnp.allclose(out_tiled, ref_f32, atol=1e-5, rtol=1e-5), "tiled mismatch vs reference"

    # bf16 compute path (f32 accumulation) — valid and beneficial on v5e/v6e/v7x.
    p_bf16 = prepare_params(raw_params, compute_dtype=jnp.bfloat16)
    out_bf16 = jax.block_until_ready(dqn_forward(x, p_bf16))
    ref_bf16 = dqn_reference(x, p_bf16)
    assert out_bf16.shape == (batch, output_size)
    assert jnp.allclose(out_bf16, ref_bf16, atol=2e-2, rtol=2e-2), "bf16 mismatch vs reference"

    print("KERNEL_OK")
</pallas_src>

<mosaic_0001>
module attributes {stable_mosaic.version = 11 : i64} {
  func.func @dqn_kernel(%arg0: i32, %arg1: memref<256x16xf32, #tpu.memory_space<vmem>>, %arg2: memref<16x64xf32, #tpu.memory_space<vmem>>, %arg3: memref<1x64xf32, #tpu.memory_space<vmem>>, %arg4: memref<64x64xf32, #tpu.memory_space<vmem>>, %arg5: memref<1x64xf32, #tpu.memory_space<vmem>>, %arg6: memref<64x4xf32, #tpu.memory_space<vmem>>, %arg7: memref<1x4xf32, #tpu.memory_space<vmem>>, %arg8: memref<256x4xf32, #tpu.memory_space<vmem>>) attributes {dimension_semantics = [#tpu.dimension_semantics<parallel>], iteration_bounds = array<i64: 1>, scalar_prefetch = 0 : i64, scratch_operands = 0 : i64, tpu.core_type = #tpu.core_type<tc>, window_params = [{transform_indices = @transform_0, window_bounds = array<i64: 256, 16>}, {pipeline_mode = #tpu.pipeline_mode<synchronous>, transform_indices = @transform_1, window_bounds = array<i64: 16, 64>}, {pipeline_mode = #tpu.pipeline_mode<synchronous>, transform_indices = @transform_2, window_bounds = array<i64: 1, 64>}, {pipeline_mode = #tpu.pipeline_mode<synchronous>, transform_indices = @transform_3, window_bounds = array<i64: 64, 64>}, {pipeline_mode = #tpu.pipeline_mode<synchronous>, transform_indices = @transform_4, window_bounds = array<i64: 1, 64>}, {pipeline_mode = #tpu.pipeline_mode<synchronous>, transform_indices = @transform_5, window_bounds = array<i64: 64, 4>}, {pipeline_mode = #tpu.pipeline_mode<synchronous>, transform_indices = @transform_6, window_bounds = array<i64: 1, 4>}, {transform_indices = @transform_7, window_bounds = array<i64: 256, 4>}]} {
    %c0 = arith.constant 0 : index
    %c0_0 = arith.constant 0 : index
    %0 = vector.load %arg1[%c0, %c0_0] : memref<256x16xf32, #tpu.memory_space<vmem>>, vector<256x16xf32>
    %c0_1 = arith.constant 0 : index
    %c0_2 = arith.constant 0 : index
    %1 = vector.load %arg2[%c0_1, %c0_2] : memref<16x64xf32, #tpu.memory_space<vmem>>, vector<16x64xf32>
    %cst = arith.constant dense<0.000000e+00> : vector<256x64xf32>
    %2 = tpu.matmul %0, %1, %cst {dimension_numbers = #tpu.dot_dimension_numbers<[1], [0], [0], [1], [0, 0, 1, 1], [], []>} : vector<256x16xf32>, vector<16x64xf32>, vector<256x64xf32> -> vector<256x64xf32>
    %c0_3 = arith.constant 0 : index
    %c0_4 = arith.constant 0 : index
    %3 = vector.load %arg3[%c0_3, %c0_4] : memref<1x64xf32, #tpu.memory_space<vmem>>, vector<1x64xf32>
    %4 = vector.broadcast %3 : vector<1x64xf32> to vector<256x64xf32>
    %5 = arith.addf %2, %4 : vector<256x64xf32>
    %cst_5 = arith.constant 0.000000e+00 : f32
    %6 = vector.broadcast %cst_5 : f32 to vector<256x64xf32>
    %7 = arith.maximumf %5, %6 : vector<256x64xf32>
    %c0_6 = arith.constant 0 : index
    %c0_7 = arith.constant 0 : index
    %8 = vector.load %arg4[%c0_6, %c0_7] : memref<64x64xf32, #tpu.memory_space<vmem>>, vector<64x64xf32>
    %cst_8 = arith.constant dense<0.000000e+00> : vector<256x64xf32>
    %9 = tpu.matmul %7, %8, %cst_8 {dimension_numbers = #tpu.dot_dimension_numbers<[1], [0], [0], [1], [0, 0, 1, 1], [], []>} : vector<256x64xf32>, vector<64x64xf32>, vector<256x64xf32> -> vector<256x64xf32>
    %c0_9 = arith.constant 0 : index
    %c0_10 = arith.constant 0 : index
    %10 = vector.load %arg5[%c0_9, %c0_10] : memref<1x64xf32, #tpu.memory_space<vmem>>, vector<1x64xf32>
    %11 = vector.broadcast %10 : vector<1x64xf32> to vector<256x64xf32>
    %12 = arith.addf %9, %11 : vector<256x64xf32>
    %cst_11 = arith.constant 0.000000e+00 : f32
    %13 = vector.broadcast %cst_11 : f32 to vector<256x64xf32>
    %14 = arith.maximumf %12, %13 : vector<256x64xf32>
    %c0_12 = arith.constant 0 : index
    %c0_13 = arith.constant 0 : index
    %15 = vector.load %arg6[%c0_12, %c0_13] : memref<64x4xf32, #tpu.memory_space<vmem>>, vector<64x4xf32>
    %cst_14 = arith.constant dense<0.000000e+00> : vector<256x4xf32>
    %16 = tpu.matmul %14, %15, %cst_14 {dimension_numbers = #tpu.dot_dimension_numbers<[1], [0], [0], [1], [0, 0, 1, 1], [], []>} : vector<256x64xf32>, vector<64x4xf32>, vector<256x4xf32> -> vector<256x4xf32>
    %c0_15 = arith.constant 0 : index
    %c0_16 = arith.constant 0 : index
    %17 = vector.load %arg7[%c0_15, %c0_16] : memref<1x4xf32, #tpu.memory_space<vmem>>, vector<1x4xf32>
    %18 = vector.broadcast %17 : vector<1x4xf32> to vector<256x4xf32>
    %19 = arith.addf %16, %18 : vector<256x4xf32>
    %c0_17 = arith.constant 0 : index
    %c0_18 = arith.constant 0 : index
    %20 = vector.load %arg8[%c0_17, %c0_18] : memref<256x4xf32, #tpu.memory_space<vmem>>, vector<256x4xf32>
    tpu.vector_store %arg8[%c0_17, %c0_18], %19 {strides = array<i32>} : memref<256x4xf32, #tpu.memory_space<vmem>>, vector<256x4xf32>,
    return
  }
  func.func @transform_0(%arg0: i32) -> (i32, i32) {
    %c0_i32 = arith.constant 0 : i32
    %c0_i32_0 = arith.constant 0 : i32
    return %arg0, %c0_i32 : i32, i32
  }
  func.func @transform_1(%arg0: i32) -> (i32, i32) {
    %c0_i32 = arith.constant 0 : i32
    %c0_i32_0 = arith.constant 0 : i32
    %c0_i32_1 = arith.constant 0 : i32
    return %c0_i32, %c0_i32_0 : i32, i32
  }
  func.func @transform_2(%arg0: i32) -> (i32, i32) {
    %c0_i32 = arith.constant 0 : i32
    %c0_i32_0 = arith.constant 0 : i32
    %c0_i32_1 = arith.constant 0 : i32
    return %c0_i32, %c0_i32_0 : i32, i32
  }
  func.func @transform_3(%arg0: i32) -> (i32, i32) {
    %c0_i32 = arith.constant 0 : i32
    %c0_i32_0 = arith.constant 0 : i32
    %c0_i32_1 = arith.constant 0 : i32
    return %c0_i32, %c0_i32_0 : i32, i32
  }
  func.func @transform_4(%arg0: i32) -> (i32, i32) {
    %c0_i32 = arith.constant 0 : i32
    %c0_i32_0 = arith.constant 0 : i32
    %c0_i32_1 = arith.constant 0 : i32
    return %c0_i32, %c0_i32_0 : i32, i32
  }
  func.func @transform_5(%arg0: i32) -> (i32, i32) {
    %c0_i32 = arith.constant 0 : i32
    %c0_i32_0 = arith.constant 0 : i32
    %c0_i32_1 = arith.constant 0 : i32
    return %c0_i32, %c0_i32_0 : i32, i32
  }
  func.func @transform_6(%arg0: i32) -> (i32, i32) {
    %c0_i32 = arith.constant 0 : i32
    %c0_i32_0 = arith.constant 0 : i32
    %c0_i32_1 = arith.constant 0 : i32
    return %c0_i32, %c0_i32_0 : i32, i32
  }
  func.func @transform_7(%arg0: i32) -> (i32, i32) {
    %c0_i32 = arith.constant 0 : i32
    %c0_i32_0 = arith.constant 0 : i32
    return %arg0, %c0_i32 : i32, i32
  }
}

</mosaic_0001>

<bundles_post_ra>
// kernel: tpu_custom_call.1
= control target key start
LH: loop header
LB: loop body
LE: loop exit
PB: predicated region body
PF: predicated region fallthrough
CT: control target
= control target key end

     0   :  { %vm67_vm0 = vcmask 130048   ;;  %vm436_vm1 = vcmask 523264   ;;  %vm1126_vm2 = vcmask 31744   ;;  %s2140_s1 = inlined_call_operand.vmem [shape: f32[16,64], index: 1, kind: input, shape index: {}]   ;;  %s2141_s0 = inlined_call_operand.vmem [shape: f32[256,16], index: 0, kind: input, shape index: {}]   ;;  %s2142_s3 = inlined_call_operand.vmem [shape: f32[64,64], index: 3, kind: input, shape index: {}]   ;;  %s2143_s5 = inlined_call_operand.vmem [shape: f32[64,4], index: 5, kind: input, shape index: {}]   ;;  %s2144_s2 = inlined_call_operand.vmem [shape: f32[1,64], index: 2, kind: input, shape index: {}]   ;;  %s2145_s4 = inlined_call_operand.vmem [shape: f32[1,64], index: 4, kind: input, shape index: {}]   ;;  %s2146_s6 = inlined_call_operand.vmem [shape: f32[1,4], index: 6, kind: input, shape index: {}]   ;;  %s2147_s7 = inlined_call_operand.vmem [shape: f32[256,4], index: 7, kind: output, shape index: {}]  }
   0x1   :  { %v58_v0 = vld [vmem:[%s2140_s1] sm:$0xff]  ;;  %v59_v1 = vld [vmem:[%s2140_s1 + $0x8] sm:$0xff]  ;;  %v28_v5 = vld [vmem:[%s2141_s0 + $0x10] sm:$0xff] }
   0x2   :  { %v26_v2 = vld [vmem:[%s2141_s0] sm:$0xff]  ;;  %v1556_v3 = vpack.c.bf16 %v59_v1, %v58_v0  ;;  %v27_v4 = vld [vmem:[%s2141_s0 + $0x8] sm:$0xff]  ;;  %v44_v8 = vld [vmem:[%s2141_s0 + $0x90] sm:$0xff] }
   0x3   :  { %1380 = vmatprep.mubr.msk.f32.mxu0 %vm67_vm0, %v26_v2  ;;  %v42_v6 = vld [vmem:[%s2141_s0 + $0x80] sm:$0xff]  ;;  %v43_v7 = vld [vmem:[%s2141_s0 + $0x88] sm:$0xff]  ;;  %v29_v9 = vld [vmem:[%s2141_s0 + $0x18] sm:$0xff] }
   0x4   :  { %1557 = vmatprep.subr.bf16.mxu0 %v1556_v3  ;;  %1592 = vmatprep.subr.bf16.mxu1 %v1556_v3  ;;  %v30_v10 = vld [vmem:[%s2141_s0 + $0x20] sm:$0xff]  ;;  %v45_v11 = vld [vmem:[%s2141_s0 + $0x98] sm:$0xff]  ;;  %v422_v14 = vld [vmem:[%s2142_s3 + $0x8] sm:$0xff] }
   0x5   :  { %1559 = vmatpush3.bf16.msra.mxu0 %v1556_v3  ;;  %1593 = vmatpush3.bf16.msra.mxu1 %v1556_v3  ;;  %v46_v12 = vld [vmem:[%s2141_s0 + $0xa0] sm:$0xff]  ;;  %v31_v15 = vld [vmem:[%s2141_s0 + $0x28] sm:$0xff]  ;;  %v423_v17 = vld [vmem:[%s2142_s3 + $0x10] sm:$0xff] }
   0x6   :  { %1404 = vmatprep.mubr.msk.f32.mxu1 %vm67_vm0, %v42_v6  ;;  %v421_v13 = vld [vmem:[%s2142_s3] sm:$0xff]  ;;  %v424_v18 = vld [vmem:[%s2142_s3 + $0x18] sm:$0xff]  ;;  %v32_v19 = vld [vmem:[%s2141_s0 + $0x30] sm:$0xff] }
   0x7   :  { %v1560_v16 = vpack.c.bf16 %v422_v14, %v421_v13  ;;  %v47_v20 = vld [vmem:[%s2141_s0 + $0xa8] sm:$0xff]  ;;  %v1564_v21 = vpack.c.bf16 %v424_v18, %v423_v17  ;;  %v48_v22 = vld [vmem:[%s2141_s0 + $0xb0] sm:$0xff]  ;;  %v425_v23 = vld [vmem:[%s2142_s3 + $0x20] sm:$0xff] }
   0x8   :  { %1381 = vmatmul.mubr.msk.f32.vlgmr.msra.gmra.mrb[0].mxu0 %vm67_vm0, %v27_v4  ;;  %1405 = vmatmul.mubr.msk.f32.vlgmr.msra.gmra.mrb[0].mxu1 %vm67_vm0, %v43_v7  ;;  %v426_v24 = vld [vmem:[%s2142_s3 + $0x28] sm:$0xff]  ;;  %v33_v25 = vld [vmem:[%s2141_s0 + $0x38] sm:$0xff]  ;;  %v34_v26 = vld [vmem:[%s2141_s0 + $0x40] sm:$0xff] }
   0x9   :  { %1383 = vmatprep.mubr.msk.f32.mxu0 %vm67_vm0, %v28_v5  ;;  %1407 = vmatprep.mubr.msk.f32.mxu1 %vm67_vm0, %v44_v8  ;;  %v49_v27 = vld [vmem:[%s2141_s0 + $0xb8] sm:$0xff]  ;;  %v1568_v28 = vpack.c.bf16 %v426_v24, %v425_v23  ;;  %v50_v29 = vld [vmem:[%s2141_s0 + $0xc0] sm:$0xff]  ;;  %v427_v30 = vld [vmem:[%s2142_s3 + $0x30] sm:$0xff] }
   0xa   :  { %1561 = vmatprep.subr.bf16.mxu1 %v1560_v16  ;;  %v428_v31 = vld [vmem:[%s2142_s3 + $0x38] sm:$0xff]  ;;  %v35_v32 = vld [vmem:[%s2141_s0 + $0x48] sm:$0xff]  ;;  %v36_v33 = vld [vmem:[%s2141_s0 + $0x50] sm:$0xff] }
   0xb   :  { %1563 = vmatpush3.bf16.msra.mxu1 %v1560_v16  ;;  %v51_v34 = vld [vmem:[%s2141_s0 + $0xc8] sm:$0xff]  ;;  %v1572_v35 = vpack.c.bf16 %v428_v31, %v427_v30  ;;  %v52_v36 = vld [vmem:[%s2141_s0 + $0xd0] sm:$0xff]  ;;  %v37_v37 = vld [vmem:[%s2141_s0 + $0x58] sm:$0xff] }
   0xc   :  { %1384 = vmatmul.mubr.msk.f32.gmra.mrb[2].mxu0 %vm67_vm0, %v29_v9  ;;  %1408 = vmatmul.mubr.msk.f32.gmra.mrb[2].mxu1 %vm67_vm0, %v45_v11  ;;  %v38_v38 = vld [vmem:[%s2141_s0 + $0x60] sm:$0xff]  ;;  %v53_v39 = vld [vmem:[%s2141_s0 + $0xd8] sm:$0xff]  ;;  %v39_v41 = vld [vmem:[%s2141_s0 + $0x68] sm:$0xff] }
   0xd   :  { %1386 = vmatprep.mubr.msk.f32.mxu0 %vm67_vm0, %v30_v10  ;;  %1410 = vmatprep.mubr.msk.f32.mxu1 %vm67_vm0, %v46_v12  ;;  %v54_v40 = vld [vmem:[%s2141_s0 + $0xe0] sm:$0xff]  ;;  %v40_v42 = vld [vmem:[%s2141_s0 + $0x70] sm:$0xff]  ;;  %v55_v43 = vld [vmem:[%s2141_s0 + $0xe8] sm:$0xff] }
   0xe   :  { %1565 = vmatprep.subr.bf16.mxu1 %v1564_v21  ;;  %v56_v44 = vld [vmem:[%s2141_s0 + $0xf0] sm:$0xff]  ;;  %v41_v45 = vld [vmem:[%s2141_s0 + $0x78] sm:$0xff]  ;;  %v790_v47 = vld [vmem:[%s2143_s5] sm:$0xff] }
   0xf   :  { %1567 = vmatpush3.bf16.msra.mxu1 %v1564_v21  ;;  %v57_v46 = vld [vmem:[%s2141_s0 + $0xf8] sm:$0xff]  ;;  %v791_v48 = vld [vmem:[%s2143_s5 + $0x8] sm:$0xff]  ;;  %v792_v49 = vld [vmem:[%s2143_s5 + $0x10] sm:$0xff] }
  0x10   :  { %1387 = vmatmul.mubr.msk.f32.gmra.mrb[4].mxu0 %vm67_vm0, %v31_v15  ;;  %1411 = vmatmul.mubr.msk.f32.gmra.mrb[4].mxu1 %vm67_vm0, %v47_v20  ;;  %v1576_v50 = vpack.c.bf16 %v791_v48, %v790_v47  ;;  %v793_v51 = vld [vmem:[%s2143_s5 + $0x18] sm:$0xff]  ;;  %v794_v53 = vld [vmem:[%s2143_s5 + $0x20] sm:$0xff]  ;;  %v795_v54 = vld [vmem:[%s2143_s5 + $0x28] sm:$0xff] }
  0x11   :  { %1389 = vmatprep.mubr.msk.f32.mxu0 %vm67_vm0, %v32_v19  ;;  %1413 = vmatprep.mubr.msk.f32.mxu1 %vm67_vm0, %v48_v22  ;;  %v1580_v52 = vpack.c.bf16 %v793_v51, %v792_v49  ;;  %v1584_v55 = vpack.c.bf16 %v795_v54, %v794_v53  ;;  %v796_v56 = vld [vmem:[%s2143_s5 + $0x30] sm:$0xff]  ;;  %v797_v57 = vld [vmem:[%s2143_s5 + $0x38] sm:$0xff]  ;;  %v1819_v59 = vld [vmem:[%s2144_s2] ss:$0 sm:$0xff] }
  0x12   :  { %1569 = vmatprep.subr.bf16.mxu1 %v1568_v28  ;;  %1577 = vmatprep.subr.bf16.mxu0 %v1576_v50  ;;  %v1588_v58 = vpack.c.bf16 %v797_v57, %v796_v56 }
  0x13   :  { %1571 = vmatpush3.bf16.msra.mxu1 %v1568_v28  ;;  %1579 = vmatpush3.bf16.msra.mxu0 %v1576_v50 }
  0x14   :  { %1390 = vmatmul.mubr.msk.f32.gmra.mrb[6].mxu0 %vm67_vm0, %v33_v25  ;;  %1414 = vmatmul.mubr.msk.f32.gmra.mrb[6].mxu1 %vm67_vm0, %v49_v27 }
  0x15   :  { %1392 = vmatprep.mubr.msk.f32.mxu0 %vm67_vm0, %v34_v26  ;;  %1416 = vmatprep.mubr.msk.f32.mxu1 %vm67_vm0, %v50_v29 }
  0x16   :  { %1573 = vmatprep.subr.bf16.mxu1 %v1572_v35  ;;  %1581 = vmatprep.subr.bf16.mxu0 %v1580_v52 }
  0x17   :  { %1575 = vmatpush3.bf16.msra.mxu1 %v1572_v35  ;;  %1583 = vmatpush3.bf16.msra.mxu0 %v1580_v52 }
  0x18   :  { %1393 = vmatmul.mubr.msk.f32.gmra.mrb[8].mxu0 %vm67_vm0, %v35_v32  ;;  %1417 = vmatmul.mubr.msk.f32.gmra.mrb[8].mxu1 %vm67_vm0, %v51_v34 }
  0x19   :  { %1395 = vmatprep.mubr.msk.f32.mxu0 %vm67_vm0, %v36_v33  ;;  %1419 = vmatprep.mubr.msk.f32.mxu1 %vm67_vm0, %v52_v36 }
  0x1a   :  { %1585 = vmatprep.subr.bf16.mxu0 %v1584_v55 }
  0x1b   :  { %1587 = vmatpush3.bf16.msra.mxu0 %v1584_v55 }
  0x1c   :  { %1396 = vmatmul.mubr.msk.f32.gmra.mrb[10].mxu0 %vm67_vm0, %v37_v37  ;;  %1420 = vmatmul.mubr.msk.f32.gmra.mrb[10].mxu1 %vm67_vm0, %v53_v39 }
  0x1d   :  { %1398 = vmatprep.mubr.msk.f32.mxu0 %vm67_vm0, %v38_v38  ;;  %1422 = vmatprep.mubr.msk.f32.mxu1 %vm67_vm0, %v54_v40 }
  0x1e   :  { %1589 = vmatprep.subr.bf16.mxu0 %v1588_v58 }
  0x1f   :  { %1591 = vmatpush3.bf16.msra.mxu0 %v1588_v58 }
  0x20   :  { %1399 = vmatmul.mubr.msk.f32.gmra.mrb[12].mxu0 %vm67_vm0, %v39_v41  ;;  %1423 = vmatmul.mubr.msk.f32.gmra.mrb[12].mxu1 %vm67_vm0, %v55_v43 }
  0x21   :  { %1401 = vmatprep.mubr.msk.f32.mxu0 %vm67_vm0, %v40_v42  ;;  %1425 = vmatprep.mubr.msk.f32.mxu1 %vm67_vm0, %v56_v44 }
  0x24   :  { %1402 = vmatmul.mubr.msk.f32.gmra.mrb[14].mxu0 %vm67_vm0, %v41_v45  ;;  %1426 = vmatmul.mubr.msk.f32.gmra.mrb[14].mxu1 %vm67_vm0, %v57_v46 }
  0xdb   :  { %v1382_v60 = vpop.f32.mrb[0].mxu0  ;;  %v1822_v63 = vpop.f32.mrb[0].mxu1 }
  0xdc   :  { %v236_v61 = vadd.f32 %v1382_v60, %v1819_v59  ;;  %v230_v62 = vpop.f32.mrb[1].mxu0  ;;  %v1825_v1 = vpop.f32.mrb[1].mxu1 }
  0xdd   :  { %v231_v0 = vadd.f32 %v1819_v59, %v230_v62  ;;  %v311_v52 = vadd.f32 %v1819_v59, %v1825_v1  ;;  %v316_v1 = vadd.f32 %v1822_v63, %v1819_v59 }
  0xde   :  { %v390_v4 = vmax.f32 %v236_v61, 0.0 }
  0xdf   :  { %v389_v2 = vmax.f32 %v231_v0, 0.0  ;;  %v1385_v3 = vpop.f32.mrb[2].mxu0  ;;  %v1828_v7 = vpop.f32.mrb[2].mxu1  ;;  %v405_v61 = vmax.f32 %v311_v52, 0.0 }
  0xe0   :  { %v246_v5 = vadd.f32 %v1385_v3, %v1819_v59  ;;  %v240_v6 = vpop.f32.mrb[3].mxu0  ;;  %v1832_v9 = vpop.f32.mrb[3].mxu1 }
  0xe1   :  { %v241_v8 = vadd.f32 %v1819_v59, %v240_v6  ;;  %1444 = vmatprep.mubr.msk.f32.mxu1 %vm436_vm1, %v389_v2  ;;  %v321_v62 = vadd.f32 %v1819_v59, %v1832_v9 }
  0xe2   :  { %1445 = vmatmul.mubr.msk.f32.vlgmr.msra.gmra.mrb[16].mxu1 %vm436_vm1, %v390_v4  ;;  %v392_v12 = vmax.f32 %v246_v5, 0.0  ;;  %v406_v4 = vmax.f32 %v316_v1, 0.0  ;;  %v326_v5 = vadd.f32 %v1828_v7, %v1819_v59 }
  0xe3   :  { %v391_v10 = vmax.f32 %v241_v8, 0.0  ;;  %v1388_v11 = vpop.f32.mrb[4].mxu0  ;;  %v1836_v15 = vpop.f32.mrb[4].mxu1  ;;  %v407_v2 = vmax.f32 %v321_v62, 0.0 }
  0xe4   :  { %v256_v13 = vadd.f32 %v1388_v11, %v1819_v59  ;;  %v250_v14 = vpop.f32.mrb[5].mxu0  ;;  %v330_v17 = vpop.f32.mrb[5].mxu1  ;;  %v408_v8 = vmax.f32 %v326_v5, 0.0  ;;  %v336_v9 = vadd.f32 %v1836_v15, %v1819_v59 }
  0xe5   :  { %v251_v16 = vadd.f32 %v1819_v59, %v250_v14  ;;  %1447 = vmatprep.mubr.msk.f32.mxu1 %vm436_vm1, %v391_v10  ;;  %v331_v3 = vadd.f32 %v1819_v59, %v330_v17 }
  0xe6   :  { %1448 = vmatmul.mubr.msk.f32.gmra.mrb[18].mxu1 %vm436_vm1, %v392_v12  ;;  %v394_v20 = vmax.f32 %v256_v13, 0.0  ;;  %v410_v12 = vmax.f32 %v336_v9, 0.0 }
  0xe7   :  { %v393_v18 = vmax.f32 %v251_v16, 0.0  ;;  %v1391_v19 = vpop.f32.mrb[6].mxu0  ;;  %v1842_v23 = vpop.f32.mrb[6].mxu1  ;;  %v409_v6 = vmax.f32 %v331_v3, 0.0 }
  0xe8   :  { %v266_v21 = vadd.f32 %v1391_v19, %v1819_v59  ;;  %v260_v22 = vpop.f32.mrb[7].mxu0  ;;  %v340_v25 = vpop.f32.mrb[7].mxu1  ;;  %v346_v7 = vadd.f32 %v1842_v23, %v1819_v59 }
  0xe9   :  { %v261_v24 = vadd.f32 %v1819_v59, %v260_v22  ;;  %1450 = vmatprep.mubr.msk.f32.mxu1 %vm436_vm1, %v393_v18  ;;  %v341_v63 = vadd.f32 %v1819_v59, %v340_v25 }
  0xea   :  { %1451 = vmatmul.mubr.msk.f32.gmra.mrb[20].mxu1 %vm436_vm1, %v394_v20  ;;  %v396_v28 = vmax.f32 %v266_v21, 0.0  ;;  %v412_v16 = vmax.f32 %v346_v7, 0.0 }
  0xeb   :  { %v395_v26 = vmax.f32 %v261_v24, 0.0  ;;  %v1394_v27 = vpop.f32.mrb[8].mxu0  ;;  %v1848_v31 = vpop.f32.mrb[8].mxu1  ;;  %v411_v10 = vmax.f32 %v341_v63, 0.0 }
  0xec   :  { %v276_v29 = vadd.f32 %v1394_v27, %v1819_v59  ;;  %v270_v30 = vpop.f32.mrb[9].mxu0  ;;  %v350_v33 = vpop.f32.mrb[9].mxu1  ;;  %v356_v15 = vadd.f32 %v1848_v31, %v1819_v59 }
  0xed   :  { %v271_v32 = vadd.f32 %v1819_v59, %v270_v30  ;;  %1453 = vmatprep.mubr.msk.f32.mxu1 %vm436_vm1, %v395_v26  ;;  %v351_v11 = vadd.f32 %v1819_v59, %v350_v33 }
  0xee   :  { %1454 = vmatmul.mubr.msk.f32.gmra.mrb[22].mxu1 %vm436_vm1, %v396_v28  ;;  %v398_v36 = vmax.f32 %v276_v29, 0.0  ;;  %v414_v19 = vmax.f32 %v356_v15, 0.0  ;;  %v1909_v29 = vld [vmem:[%s2145_s4] ss:$0 sm:$0xff] }
  0xef   :  { %v397_v34 = vmax.f32 %v271_v32, 0.0  ;;  %v1397_v35 = vpop.f32.mrb[10].mxu0  ;;  %v1421_v39 = vpop.f32.mrb[10].mxu1  ;;  %v413_v13 = vmax.f32 %v351_v11, 0.0 }
  0xf0   :  { %v286_v37 = vadd.f32 %v1397_v35, %v1819_v59  ;;  %v280_v38 = vpop.f32.mrb[11].mxu0  ;;  %v360_v41 = vpop.f32.mrb[11].mxu1  ;;  %v366_v20 = vadd.f32 %v1421_v39, %v1819_v59 }
  0xf1   :  { %v281_v40 = vadd.f32 %v1819_v59, %v280_v38  ;;  %1456 = vmatprep.mubr.msk.f32.mxu1 %vm436_vm1, %v397_v34  ;;  %v361_v14 = vadd.f32 %v1819_v59, %v360_v41 }
  0xf2   :  { %1457 = vmatmul.mubr.msk.f32.gmra.mrb[24].mxu1 %vm436_vm1, %v398_v36  ;;  %v400_v44 = vmax.f32 %v286_v37, 0.0  ;;  %v416_v23 = vmax.f32 %v366_v20, 0.0 }
  0xf3   :  { %v399_v42 = vmax.f32 %v281_v40, 0.0  ;;  %v1400_v43 = vpop.f32.mrb[12].mxu0  ;;  %v1424_v47 = vpop.f32.mrb[12].mxu1  ;;  %v415_v17 = vmax.f32 %v361_v14, 0.0 }
  0xf4   :  { %v296_v45 = vadd.f32 %v1400_v43, %v1819_v59  ;;  %v290_v46 = vpop.f32.mrb[13].mxu0  ;;  %v370_v49 = vpop.f32.mrb[13].mxu1  ;;  %v376_v24 = vadd.f32 %v1424_v47, %v1819_v59 }
  0xf5   :  { %v291_v48 = vadd.f32 %v1819_v59, %v290_v46  ;;  %1459 = vmatprep.mubr.msk.f32.mxu1 %vm436_vm1, %v399_v42  ;;  %v371_v18 = vadd.f32 %v1819_v59, %v370_v49 }
  0xf6   :  { %1460 = vmatmul.mubr.msk.f32.gmra.mrb[26].mxu1 %vm436_vm1, %v400_v44  ;;  %v402_v53 = vmax.f32 %v296_v45, 0.0  ;;  %v418_v26 = vmax.f32 %v376_v24, 0.0 }
  0xf7   :  { %v401_v50 = vmax.f32 %v291_v48, 0.0  ;;  %v1403_v51 = vpop.f32.mrb[14].mxu0  ;;  %v1427_v56 = vpop.f32.mrb[14].mxu1  ;;  %v417_v21 = vmax.f32 %v371_v18, 0.0 }
  0xf8   :  { %v306_v54 = vadd.f32 %v1403_v51, %v1819_v59  ;;  %v300_v55 = vpop.f32.mrb[15].mxu0  ;;  %v380_v58 = vpop.f32.mrb[15].mxu1  ;;  %v386_v27 = vadd.f32 %v1427_v56, %v1819_v59 }
  0xf9   :  { %v301_v57 = vadd.f32 %v1819_v59, %v300_v55  ;;  %1462 = vmatprep.mubr.msk.f32.mxu1 %vm436_vm1, %v401_v50  ;;  %v381_v22 = vadd.f32 %v1819_v59, %v380_v58 }
  0xfa   :  { %1463 = vmatmul.mubr.msk.f32.gmra.mrb[28].mxu1 %vm436_vm1, %v402_v53  ;;  %v404_v0 = vmax.f32 %v306_v54, 0.0  ;;  %v420_v28 = vmax.f32 %v386_v27, 0.0 }
  0xfb   :  { %v403_v60 = vmax.f32 %v301_v57, 0.0  ;;  %v419_v25 = vmax.f32 %v381_v22, 0.0 }
  0xfd   :  { %1465 = vmatprep.mubr.msk.f32.mxu1 %vm436_vm1, %v403_v60 }
  0xfe   :  { %1466 = vmatmul.mubr.msk.f32.gmra.mrb[30].mxu1 %vm436_vm1, %v404_v0 }
  0xff   :  { %1468 = vmatprep.mubr.msk.f32.mxu1 %vm436_vm1, %v405_v61 }
 0x102   :  { %1469 = vmatmul.mubr.msk.f32.gmra.mrb[32].mxu1 %vm436_vm1, %v406_v4 }
 0x103   :  { %1471 = vmatprep.mubr.msk.f32.mxu1 %vm436_vm1, %v407_v2 }
 0x106   :  { %1472 = vmatmul.mubr.msk.f32.gmra.mrb[34].mxu1 %vm436_vm1, %v408_v8 }
 0x107   :  { %1474 = vmatprep.mubr.msk.f32.mxu1 %vm436_vm1, %v409_v6 }
 0x10a   :  { %1475 = vmatmul.mubr.msk.f32.gmra.mrb[36].mxu1 %vm436_vm1, %v410_v12 }
 0x10b   :  { %1477 = vmatprep.mubr.msk.f32.mxu1 %vm436_vm1, %v411_v10 }
 0x10e   :  { %1478 = vmatmul.mubr.msk.f32.gmra.mrb[38].mxu1 %vm436_vm1, %v412_v16 }
 0x10f   :  { %1480 = vmatprep.mubr.msk.f32.mxu1 %vm436_vm1, %v413_v13 }
 0x112   :  { %1481 = vmatmul.mubr.msk.f32.gmra.mrb[40].mxu1 %vm436_vm1, %v414_v19 }
 0x113   :  { %1483 = vmatprep.mubr.msk.f32.mxu1 %vm436_vm1, %v415_v17 }
 0x116   :  { %1484 = vmatmul.mubr.msk.f32.gmra.mrb[42].mxu1 %vm436_vm1, %v416_v23 }
 0x117   :  { %1486 = vmatprep.mubr.msk.f32.mxu1 %vm436_vm1, %v417_v21 }
 0x11a   :  { %1487 = vmatmul.mubr.msk.f32.gmra.mrb[44].mxu1 %vm436_vm1, %v418_v26 }
 0x11b   :  { %1489 = vmatprep.mubr.msk.f32.mxu1 %vm436_vm1, %v419_v25 }
 0x11e   :  { %1490 = vmatmul.mubr.msk.f32.gmra.mrb[46].mxu1 %vm436_vm1, %v420_v28 }
 0x1b5   :  { %v1446_v30 = vpop.f32.mrb[16].mxu1 }
 0x1b6   :  { %v605_v31 = vadd.f32 %v1446_v30, %v1909_v29  ;;  %v599_v32 = vpop.f32.mrb[17].mxu1 }
 0x1b7   :  { %v600_v33 = vadd.f32 %v1909_v29, %v599_v32 }
 0x1b8   :  { %v759_v35 = vmax.f32 %v605_v31, 0.0 }
 0x1b9   :  { %v758_v34 = vmax.f32 %v600_v33, 0.0  ;;  %v1449_v59 = vpop.f32.mrb[18].mxu1 }
 0x1ba   :  { %v615_v36 = vadd.f32 %v1449_v59, %v1909_v29  ;;  %v609_v37 = vpop.f32.mrb[19].mxu1 }
 0x1bb   :  { %v610_v38 = vadd.f32 %v1909_v29, %v609_v37  ;;  %1508 = vmatprep.mubr.msk.f32.mxu0 %vm436_vm1, %v758_v34 }
 0x1bc   :  { %1509 = vmatmul.mubr.msk.f32.vlgmr.msra.gmra.mrb[16].mxu0 %vm436_vm1, %v759_v35  ;;  %v761_v41 = vmax.f32 %v615_v36, 0.0 }
 0x1bd   :  { %v760_v39 = vmax.f32 %v610_v38, 0.0  ;;  %v1452_v40 = vpop.f32.mrb[20].mxu1 }
 0x1be   :  { %v625_v42 = vadd.f32 %v1452_v40, %v1909_v29  ;;  %v619_v43 = vpop.f32.mrb[21].mxu1 }
 0x1bf   :  { %v620_v44 = vadd.f32 %v1909_v29, %v619_v43  ;;  %1511 = vmatprep.mubr.msk.f32.mxu0 %vm436_vm1, %v760_v39 }
 0x1c0   :  { %1512 = vmatmul.mubr.msk.f32.gmra.mrb[18].mxu0 %vm436_vm1, %v761_v41  ;;  %v763_v47 = vmax.f32 %v625_v42, 0.0 }
 0x1c1   :  { %v762_v45 = vmax.f32 %v620_v44, 0.0  ;;  %v1455_v46 = vpop.f32.mrb[22].mxu1 }
 0x1c2   :  { %v635_v48 = vadd.f32 %v1455_v46, %v1909_v29  ;;  %v629_v49 = vpop.f32.mrb[23].mxu1 }
 0x1c3   :  { %v630_v50 = vadd.f32 %v1909_v29, %v629_v49  ;;  %1514 = vmatprep.mubr.msk.f32.mxu0 %vm436_vm1, %v762_v45 }
 0x1c4   :  { %1515 = vmatmul.mubr.msk.f32.gmra.mrb[20].mxu0 %vm436_vm1, %v763_v47  ;;  %v765_v53 = vmax.f32 %v635_v48, 0.0 }
 0x1c5   :  { %v764_v51 = vmax.f32 %v630_v50, 0.0  ;;  %v1458_v52 = vpop.f32.mrb[24].mxu1 }
 0x1c6   :  { %v645_v54 = vadd.f32 %v1458_v52, %v1909_v29  ;;  %v639_v55 = vpop.f32.mrb[25].mxu1 }
 0x1c7   :  { %v640_v56 = vadd.f32 %v1909_v29, %v639_v55  ;;  %1517 = vmatprep.mubr.msk.f32.mxu0 %vm436_vm1, %v764_v51 }
 0x1c8   :  { %1518 = vmatmul.mubr.msk.f32.gmra.mrb[22].mxu0 %vm436_vm1, %v765_v53  ;;  %v767_v60 = vmax.f32 %v645_v54, 0.0 }
 0x1c9   :  { %v766_v57 = vmax.f32 %v640_v56, 0.0  ;;  %v1461_v58 = vpop.f32.mrb[26].mxu1 }
 0x1ca   :  { %v655_v61 = vadd.f32 %v1461_v58, %v1909_v29  ;;  %v649_v62 = vpop.f32.mrb[27].mxu1 }
 0x1cb   :  { %v650_v0 = vadd.f32 %v1909_v29, %v649_v62  ;;  %1520 = vmatprep.mubr.msk.f32.mxu0 %vm436_vm1, %v766_v57 }
 0x1cc   :  { %1521 = vmatmul.mubr.msk.f32.gmra.mrb[24].mxu0 %vm436_vm1, %v767_v60  ;;  %v769_v3 = vmax.f32 %v655_v61, 0.0 }
 0x1cd   :  { %v768_v1 = vmax.f32 %v650_v0, 0.0  ;;  %v1464_v2 = vpop.f32.mrb[28].mxu1  ;;  %v1978_v0 = vld [vmem:[%s2146_s6] ss:$0 sm:$0xff] }
 0x1ce   :  { %v665_v4 = vadd.f32 %v1464_v2, %v1909_v29  ;;  %v659_v5 = vpop.f32.mrb[29].mxu1 }
 0x1cf   :  { %v660_v6 = vadd.f32 %v1909_v29, %v659_v5  ;;  %1523 = vmatprep.mubr.msk.f32.mxu0 %vm436_vm1, %v768_v1 }
 0x1d0   :  { %1524 = vmatmul.mubr.msk.f32.gmra.mrb[26].mxu0 %vm436_vm1, %v769_v3  ;;  %v771_v9 = vmax.f32 %v665_v4, 0.0 }
 0x1d1   :  { %v770_v63 = vmax.f32 %v660_v6, 0.0  ;;  %v1467_v8 = vpop.f32.mrb[30].mxu1 }
 0x1d2   :  { %v675_v10 = vadd.f32 %v1467_v8, %v1909_v29  ;;  %v669_v11 = vpop.f32.mrb[31].mxu1 }
 0x1d3   :  { %v670_v12 = vadd.f32 %v1909_v29, %v669_v11  ;;  %1526 = vmatprep.mubr.msk.f32.mxu0 %vm436_vm1, %v770_v63 }
 0x1d4   :  { %1527 = vmatmul.mubr.msk.f32.gmra.mrb[28].mxu0 %vm436_vm1, %v771_v9  ;;  %v773_v14 = vmax.f32 %v675_v10, 0.0 }
 0x1d5   :  { %v772_v7 = vmax.f32 %v670_v12, 0.0  ;;  %v1470_v13 = vpop.f32.mrb[32].mxu1 }
 0x1d6   :  { %v685_v16 = vadd.f32 %v1470_v13, %v1909_v29  ;;  %v679_v15 = vpop.f32.mrb[33].mxu1 }
 0x1d7   :  { %v680_v17 = vadd.f32 %v1909_v29, %v679_v15  ;;  %1529 = vmatprep.mubr.msk.f32.mxu0 %vm436_vm1, %v772_v7 }
 0x1d8   :  { %1530 = vmatmul.mubr.msk.f32.gmra.mrb[30].mxu0 %vm436_vm1, %v773_v14  ;;  %v775_v20 = vmax.f32 %v685_v16, 0.0 }
 0x1d9   :  { %v774_v18 = vmax.f32 %v680_v17, 0.0  ;;  %v1473_v19 = vpop.f32.mrb[34].mxu1 }
 0x1da   :  { %v695_v21 = vadd.f32 %v1473_v19, %v1909_v29  ;;  %v689_v22 = vpop.f32.mrb[35].mxu1 }
 0x1db   :  { %v690_v23 = vadd.f32 %v1909_v29, %v689_v22  ;;  %1532 = vmatprep.mubr.msk.f32.mxu0 %vm436_vm1, %v774_v18 }
 0x1dc   :  { %1533 = vmatmul.mubr.msk.f32.gmra.mrb[32].mxu0 %vm436_vm1, %v775_v20  ;;  %v777_v26 = vmax.f32 %v695_v21, 0.0 }
 0x1dd   :  { %v776_v24 = vmax.f32 %v690_v23, 0.0  ;;  %v1476_v25 = vpop.f32.mrb[36].mxu1 }
 0x1de   :  { %v705_v27 = vadd.f32 %v1476_v25, %v1909_v29  ;;  %v699_v28 = vpop.f32.mrb[37].mxu1 }
 0x1df   :  { %v700_v30 = vadd.f32 %v1909_v29, %v699_v28  ;;  %1535 = vmatprep.mubr.msk.f32.mxu0 %vm436_vm1, %v776_v24 }
 0x1e0   :  { %1536 = vmatmul.mubr.msk.f32.gmra.mrb[34].mxu0 %vm436_vm1, %v777_v26  ;;  %v779_v33 = vmax.f32 %v705_v27, 0.0 }
 0x1e1   :  { %v778_v31 = vmax.f32 %v700_v30, 0.0  ;;  %v1479_v32 = vpop.f32.mrb[38].mxu1 }
 0x1e2   :  { %v715_v34 = vadd.f32 %v1479_v32, %v1909_v29  ;;  %v709_v59 = vpop.f32.mrb[39].mxu1 }
 0x1e3   :  { %v710_v35 = vadd.f32 %v1909_v29, %v709_v59  ;;  %1538 = vmatprep.mubr.msk.f32.mxu0 %vm436_vm1, %v778_v31 }
 0x1e4   :  { %1539 = vmatmul.mubr.msk.f32.gmra.mrb[36].mxu0 %vm436_vm1, %v779_v33  ;;  %v781_v38 = vmax.f32 %v715_v34, 0.0 }
 0x1e5   :  { %v780_v36 = vmax.f32 %v710_v35, 0.0  ;;  %v1482_v37 = vpop.f32.mrb[40].mxu1 }
 0x1e6   :  { %v725_v39 = vadd.f32 %v1482_v37, %v1909_v29  ;;  %v719_v40 = vpop.f32.mrb[41].mxu1 }
 0x1e7   :  { %v720_v41 = vadd.f32 %v1909_v29, %v719_v40  ;;  %1541 = vmatprep.mubr.msk.f32.mxu0 %vm436_vm1, %v780_v36 }
 0x1e8   :  { %1542 = vmatmul.mubr.msk.f32.gmra.mrb[38].mxu0 %vm436_vm1, %v781_v38  ;;  %v783_v44 = vmax.f32 %v725_v39, 0.0 }
 0x1e9   :  { %v782_v42 = vmax.f32 %v720_v41, 0.0  ;;  %v1485_v43 = vpop.f32.mrb[42].mxu1 }
 0x1ea   :  { %v735_v45 = vadd.f32 %v1485_v43, %v1909_v29  ;;  %v729_v46 = vpop.f32.mrb[43].mxu1 }
 0x1eb   :  { %v730_v47 = vadd.f32 %v1909_v29, %v729_v46  ;;  %1544 = vmatprep.mubr.msk.f32.mxu0 %vm436_vm1, %v782_v42 }
 0x1ec   :  { %1545 = vmatmul.mubr.msk.f32.gmra.mrb[40].mxu0 %vm436_vm1, %v783_v44  ;;  %v785_v50 = vmax.f32 %v735_v45, 0.0 }
 0x1ed   :  { %v784_v48 = vmax.f32 %v730_v47, 0.0  ;;  %v1488_v49 = vpop.f32.mrb[44].mxu1 }
 0x1ee   :  { %v745_v51 = vadd.f32 %v1488_v49, %v1909_v29  ;;  %v739_v52 = vpop.f32.mrb[45].mxu1 }
 0x1ef   :  { %v740_v53 = vadd.f32 %v1909_v29, %v739_v52  ;;  %1547 = vmatprep.mubr.msk.f32.mxu0 %vm436_vm1, %v784_v48 }
 0x1f0   :  { %1548 = vmatmul.mubr.msk.f32.gmra.mrb[42].mxu0 %vm436_vm1, %v785_v50  ;;  %v787_v56 = vmax.f32 %v745_v51, 0.0 }
 0x1f1   :  { %v786_v54 = vmax.f32 %v740_v53, 0.0  ;;  %v1491_v55 = vpop.f32.mrb[46].mxu1 }
 0x1f2   :  { %v755_v57 = vadd.f32 %v1491_v55, %v1909_v29  ;;  %v749_v58 = vpop.f32.mrb[47].mxu1 }
 0x1f3   :  { %v750_v60 = vadd.f32 %v1909_v29, %v749_v58  ;;  %1550 = vmatprep.mubr.msk.f32.mxu0 %vm436_vm1, %v786_v54 }
 0x1f4   :  { %1551 = vmatmul.mubr.msk.f32.gmra.mrb[44].mxu0 %vm436_vm1, %v787_v56  ;;  %v789_v62 = vmax.f32 %v755_v57, 0.0 }
 0x1f5   :  { %v788_v61 = vmax.f32 %v750_v60, 0.0 }
 0x1f7   :  { %1553 = vmatprep.mubr.msk.f32.mxu0 %vm436_vm1, %v788_v61 }
 0x1f8   :  { %1554 = vmatmul.mubr.msk.f32.gmra.mrb[46].mxu0 %vm436_vm1, %v789_v62 }
 0x28f   :  { %v1510_v1 = vpop.f32.mrb[16].mxu0 }
 0x290   :  { %v973_v2 = vadd.f32 %v1510_v1, %v1978_v0  ;;  %v967_v29 = vpop.f32.mrb[17].mxu0 }
 0x291   :  { %v968_v3 = vadd.f32 %v1978_v0, %v967_v29 }
 0x292   :  { %1128 = vst.msk [vmem:[%s2147_s7 + $0x8] sm:$0xff] %vm1126_vm2, %v973_v2 }
 0x293   :  { %1127 = vst.msk [vmem:[%s2147_s7] sm:$0xff] %vm1126_vm2, %v968_v3  ;;  %v1513_v4 = vpop.f32.mrb[18].mxu0 }
 0x294   :  { %v983_v5 = vadd.f32 %v1513_v4, %v1978_v0  ;;  %v977_v6 = vpop.f32.mrb[19].mxu0 }
 0x295   :  { %v978_v63 = vadd.f32 %v1978_v0, %v977_v6 }
 0x296   :  { %1130 = vst.msk [vmem:[%s2147_s7 + $0x18] sm:$0xff] %vm1126_vm2, %v983_v5 }
 0x297   :  { %1129 = vst.msk [vmem:[%s2147_s7 + $0x10] sm:$0xff] %vm1126_vm2, %v978_v63  ;;  %v1516_v8 = vpop.f32.mrb[20].mxu0 }
 0x298   :  { %v993_v9 = vadd.f32 %v1516_v8, %v1978_v0  ;;  %v987_v10 = vpop.f32.mrb[21].mxu0 }
 0x299   :  { %v988_v11 = vadd.f32 %v1978_v0, %v987_v10 }
 0x29a   :  { %1132 = vst.msk [vmem:[%s2147_s7 + $0x28] sm:$0xff] %vm1126_vm2, %v993_v9 }
 0x29b   :  { %1131 = vst.msk [vmem:[%s2147_s7 + $0x20] sm:$0xff] %vm1126_vm2, %v988_v11  ;;  %v1519_v12 = vpop.f32.mrb[22].mxu0 }
 0x29c   :  { %v1003_v7 = vadd.f32 %v1519_v12, %v1978_v0  ;;  %v997_v13 = vpop.f32.mrb[23].mxu0 }
 0x29d   :  { %v998_v14 = vadd.f32 %v1978_v0, %v997_v13 }
 0x29e   :  { %1134 = vst.msk [vmem:[%s2147_s7 + $0x38] sm:$0xff] %vm1126_vm2, %v1003_v7 }
 0x29f   :  { %1133 = vst.msk [vmem:[%s2147_s7 + $0x30] sm:$0xff] %vm1126_vm2, %v998_v14  ;;  %v1522_v16 = vpop.f32.mrb[24].mxu0 }
 0x2a0   :  { %v1013_v15 = vadd.f32 %v1522_v16, %v1978_v0  ;;  %v1007_v17 = vpop.f32.mrb[25].mxu0 }
 0x2a1   :  { %v1008_v18 = vadd.f32 %v1978_v0, %v1007_v17 }
 0x2a2   :  { %1136 = vst.msk [vmem:[%s2147_s7 + $0x48] sm:$0xff] %vm1126_vm2, %v1013_v15 }
 0x2a3   :  { %1135 = vst.msk [vmem:[%s2147_s7 + $0x40] sm:$0xff] %vm1126_vm2, %v1008_v18  ;;  %v1525_v19 = vpop.f32.mrb[26].mxu0 }
 0x2a4   :  { %v1023_v20 = vadd.f32 %v1525_v19, %v1978_v0  ;;  %v1017_v21 = vpop.f32.mrb[27].mxu0 }
 0x2a5   :  { %v1018_v22 = vadd.f32 %v1978_v0, %v1017_v21 }
 0x2a6   :  { %1138 = vst.msk [vmem:[%s2147_s7 + $0x58] sm:$0xff] %vm1126_vm2, %v1023_v20 }
 0x2a7   :  { %1137 = vst.msk [vmem:[%s2147_s7 + $0x50] sm:$0xff] %vm1126_vm2, %v1018_v22  ;;  %v1528_v23 = vpop.f32.mrb[28].mxu0 }
 0x2a8   :  { %v1033_v24 = vadd.f32 %v1528_v23, %v1978_v0  ;;  %v1027_v25 = vpop.f32.mrb[29].mxu0 }
 0x2a9   :  { %v1028_v26 = vadd.f32 %v1978_v0, %v1027_v25 }
 0x2aa   :  { %1140 = vst.msk [vmem:[%s2147_s7 + $0x68] sm:$0xff] %vm1126_vm2, %v1033_v24 }
 0x2ab   :  { %1139 = vst.msk [vmem:[%s2147_s7 + $0x60] sm:$0xff] %vm1126_vm2, %v1028_v26  ;;  %v1531_v27 = vpop.f32.mrb[30].mxu0 }
 0x2ac   :  { %v1043_v28 = vadd.f32 %v1531_v27, %v1978_v0  ;;  %v1037_v30 = vpop.f32.mrb[31].mxu0 }
 0x2ad   :  { %v1038_v31 = vadd.f32 %v1978_v0, %v1037_v30 }
 0x2ae   :  { %1142 = vst.msk [vmem:[%s2147_s7 + $0x78] sm:$0xff] %vm1126_vm2, %v1043_v28 }
 0x2af   :  { %1141 = vst.msk [vmem:[%s2147_s7 + $0x70] sm:$0xff] %vm1126_vm2, %v1038_v31  ;;  %v1534_v32 = vpop.f32.mrb[32].mxu0 }
 0x2b0   :  { %v1053_v33 = vadd.f32 %v1534_v32, %v1978_v0  ;;  %v1047_v34 = vpop.f32.mrb[33].mxu0 }
 0x2b1   :  { %v1048_v59 = vadd.f32 %v1978_v0, %v1047_v34 }
 0x2b2   :  { %1144 = vst.msk [vmem:[%s2147_s7 + $0x88] sm:$0xff] %vm1126_vm2, %v1053_v33 }
 0x2b3   :  { %1143 = vst.msk [vmem:[%s2147_s7 + $0x80] sm:$0xff] %vm1126_vm2, %v1048_v59  ;;  %v1537_v35 = vpop.f32.mrb[34].mxu0 }
 0x2b4   :  { %v1063_v36 = vadd.f32 %v1537_v35, %v1978_v0  ;;  %v1057_v37 = vpop.f32.mrb[35].mxu0 }
 0x2b5   :  { %v1058_v38 = vadd.f32 %v1978_v0, %v1057_v37 }
 0x2b6   :  { %1146 = vst.msk [vmem:[%s2147_s7 + $0x98] sm:$0xff] %vm1126_vm2, %v1063_v36 }
 0x2b7   :  { %1145 = vst.msk [vmem:[%s2147_s7 + $0x90] sm:$0xff] %vm1126_vm2, %v1058_v38  ;;  %v1540_v39 = vpop.f32.mrb[36].mxu0 }
 0x2b8   :  { %v1073_v40 = vadd.f32 %v1540_v39, %v1978_v0  ;;  %v1067_v41 = vpop.f32.mrb[37].mxu0 }
 0x2b9   :  { %v1068_v42 = vadd.f32 %v1978_v0, %v1067_v41 }
 0x2ba   :  { %1148 = vst.msk [vmem:[%s2147_s7 + $0xa8] sm:$0xff] %vm1126_vm2, %v1073_v40 }
 0x2bb   :  { %1147 = vst.msk [vmem:[%s2147_s7 + $0xa0] sm:$0xff] %vm1126_vm2, %v1068_v42  ;;  %v1543_v43 = vpop.f32.mrb[38].mxu0 }
 0x2bc   :  { %v1083_v44 = vadd.f32 %v1543_v43, %v1978_v0  ;;  %v1077_v45 = vpop.f32.mrb[39].mxu0 }
 0x2bd   :  { %v1078_v46 = vadd.f32 %v1978_v0, %v1077_v45 }
 0x2be   :  { %1150 = vst.msk [vmem:[%s2147_s7 + $0xb8] sm:$0xff] %vm1126_vm2, %v1083_v44 }
 0x2bf   :  { %1149 = vst.msk [vmem:[%s2147_s7 + $0xb0] sm:$0xff] %vm1126_vm2, %v1078_v46  ;;  %v1546_v47 = vpop.f32.mrb[40].mxu0 }
 0x2c0   :  { %v1093_v48 = vadd.f32 %v1546_v47, %v1978_v0  ;;  %v1087_v49 = vpop.f32.mrb[41].mxu0 }
 0x2c1   :  { %v1088_v50 = vadd.f32 %v1978_v0, %v1087_v49 }
 0x2c2   :  { %1152 = vst.msk [vmem:[%s2147_s7 + $0xc8] sm:$0xff] %vm1126_vm2, %v1093_v48 }
 0x2c3   :  { %1151 = vst.msk [vmem:[%s2147_s7 + $0xc0] sm:$0xff] %vm1126_vm2, %v1088_v50  ;;  %v1549_v51 = vpop.f32.mrb[42].mxu0 }
 0x2c4   :  { %v1103_v52 = vadd.f32 %v1549_v51, %v1978_v0  ;;  %v1097_v53 = vpop.f32.mrb[43].mxu0 }
 0x2c5   :  { %v1098_v54 = vadd.f32 %v1978_v0, %v1097_v53 }
 0x2c6   :  { %1154 = vst.msk [vmem:[%s2147_s7 + $0xd8] sm:$0xff] %vm1126_vm2, %v1103_v52 }
 0x2c7   :  { %1153 = vst.msk [vmem:[%s2147_s7 + $0xd0] sm:$0xff] %vm1126_vm2, %v1098_v54  ;;  %v1552_v55 = vpop.f32.mrb[44].mxu0 }
 0x2c8   :  { %v1113_v56 = vadd.f32 %v1552_v55, %v1978_v0  ;;  %v1107_v57 = vpop.f32.mrb[45].mxu0 }
 0x2c9   :  { %v1108_v58 = vadd.f32 %v1978_v0, %v1107_v57 }
 0x2ca   :  { %1156 = vst.msk [vmem:[%s2147_s7 + $0xe8] sm:$0xff] %vm1126_vm2, %v1113_v56 }
 0x2cb   :  { %1155 = vst.msk [vmem:[%s2147_s7 + $0xe0] sm:$0xff] %vm1126_vm2, %v1108_v58  ;;  %v1555_v60 = vpop.f32.mrb[46].mxu0 }
 0x2cc   :  { %v1123_v61 = vadd.f32 %v1555_v60, %v1978_v0  ;;  %v1117_v62 = vpop.f32.mrb[47].mxu0 }
 0x2cd   :  { %v1118_v1 = vadd.f32 %v1978_v0, %v1117_v62 }
 0x2ce   :  { %1158 = vst.msk [vmem:[%s2147_s7 + $0xf8] sm:$0xff] %vm1126_vm2, %v1123_v61 }
 0x2cf   :  { %1157 = vst.msk [vmem:[%s2147_s7 + $0xf0] sm:$0xff] %vm1126_vm2, %v1118_v1 }

</bundles_post_ra>
